<compile_context>
chip_gen: v5e
topology: v5e:2x2
jax: 0.10.0
libtpu: 0.0.40
codegen_flags: <defaults>
</compile_context>

<pallas_src>
import math
import functools

import jax
import jax.numpy as jnp
import numpy as np
from jax.experimental import pallas as pl
from jax.experimental.pallas import tpu as pltpu


# ----------------------------- kernel ------------------------------------- #

def _layernorm(x, g, b, eps=1e-5):
    mu = jnp.mean(x, axis=-1, keepdims=True)
    xc = x - mu
    var = jnp.mean(xc * xc, axis=-1, keepdims=True)
    return xc * jax.lax.rsqrt(var + eps) * g + b


def encoder_block_kernel(
    x_ref,
    wq_ref, bq_ref, wk_ref, bk_ref, wv_ref, bv_ref,
    wo_ref, bo_ref, g1_ref, be1_ref,
    w1_ref, b1_ref, w2_ref, b2_ref, g2_ref, be2_ref,
    o_ref,
    *, n_heads, d_head, scale,
):
    bb, seq, d_model = x_ref.shape
    rows = bb * seq

    # Flatten the batch block: everything except attention is row-wise, so do it
    # on one big (rows, d_model) slab (bigger MXU matmuls, single lane-dense
    # output store per grid step).
    x = x_ref[...].reshape(rows, d_model)

    # Q/K/V projections.  Fold the 1/sqrt(d_head) attention scale into Q (the
    # score matmul is linear in Q) instead of scaling the (S, S) score matrix.
    inv_sqrt = (1.0 / math.sqrt(d_head)) if scale else 1.0
    q = (jnp.dot(x, wq_ref[...], preferred_element_type=jnp.float32)
         + bq_ref[...]) * inv_sqrt
    k = jnp.dot(x, wk_ref[...], preferred_element_type=jnp.float32) + bk_ref[...]
    v = jnp.dot(x, wv_ref[...], preferred_element_type=jnp.float32) + bv_ref[...]

    # Self-attention.  Static loop over heads; each head does one 3-D contraction
    # batched over the in-block batch axis (no kh.T transpose, no per-(batch,head)
    # tiny matmuls).
    # NOTE: at realistic seq lengths, replace this section with flash-style
    # online-softmax KV tiling (mandatory on v7x's 64 MiB VMEM).
    heads = []
    for h in range(n_heads):
        lo = h * d_head
        qh = q[:, lo:lo + d_head].reshape(bb, seq, d_head)
        kh = k[:, lo:lo + d_head].reshape(bb, seq, d_head)
        vh = v[:, lo:lo + d_head].reshape(bb, seq, d_head)
        s = jnp.einsum('bqd,bkd->bqk', qh, kh,
                       preferred_element_type=jnp.float32)        # (bb, S, S)
        s = s - jnp.max(s, axis=-1, keepdims=True)
        p = jnp.exp(s)
        # EUP approximate reciprocal instead of a VPU divide.
        p = p * pl.reciprocal(jnp.sum(p, axis=-1, keepdims=True), approx=True)
        hv = jnp.einsum('bqk,bkd->bqd', p, vh,
                        preferred_element_type=jnp.float32)        # (bb, S, dh)
        heads.append(hv.reshape(rows, d_head))
    attn = jnp.concatenate(heads, axis=-1)                         # (rows, H*dh)

    # Output projection + residual + LayerNorm.
    proj = jnp.dot(attn, wo_ref[...], preferred_element_type=jnp.float32) + bo_ref[...]
    y1 = _layernorm(x + proj, g1_ref[...], be1_ref[...])

    # Feed-forward (Linear -> ReLU -> Linear) + residual + LayerNorm.
    # NOTE: at production d_inner, add an "arbitrary" reduction grid axis over
    # d_inner (or tile the FF output-N) so w1/w2 are not fully resident.
    h1 = jnp.dot(y1, w1_ref[...], preferred_element_type=jnp.float32) + b1_ref[...]
    h1 = jnp.maximum(h1, 0.0)
    ff = jnp.dot(h1, w2_ref[...], preferred_element_type=jnp.float32) + b2_ref[...]
    y2 = _layernorm(y1 + ff, g2_ref[...], be2_ref[...])

    o_ref[...] = y2.reshape(bb, seq, d_model).astype(o_ref.dtype)


# ----------------------------- wrapper ------------------------------------ #

def encoder_block(x, params, *, n_heads, d_head, scale=True, batch_block=None):
    bs, seq, d_model = x.shape

    # Default: split the batch into two parallel blocks so both v7x TensorCores
    # get work; on v5e/v6e (single TC, grid is a serial loop) pass batch_block=bs
    # to fold the whole batch into a single grid step.
    if batch_block is None:
        batch_block = bs // 2 if (bs >= 2 and bs % 2 == 0) else bs
    assert bs % batch_block == 0, "batch_block must divide the batch size"
    n_blocks = bs // batch_block

    kern = functools.partial(
        encoder_block_kernel, n_heads=n_heads, d_head=d_head, scale=scale)

    def const2d(a):
        # Full-array block with a constant index map: the Pallas pipeline skips
        # re-DMA when the block index does not change across grid steps.
        # (At production weight sizes, also single-buffer these specs /
        # tile the contraction to bound resident weight VMEM on v7x.)
        return pl.BlockSpec(a.shape, lambda i: (0, 0))

    in_specs = [pl.BlockSpec((batch_block, seq, d_model), lambda i: (i, 0, 0))]
    in_specs += [const2d(a) for a in params]
    out_spec = pl.BlockSpec((batch_block, seq, d_model), lambda i: (i, 0, 0))

    return pl.pallas_call(
        kern,
        out_shape=jax.ShapeDtypeStruct((bs, seq, d_model), x.dtype),
        grid_spec=pltpu.PrefetchScalarGridSpec(
            num_scalar_prefetch=0,
            grid=(n_blocks,),
            in_specs=in_specs,
            out_specs=out_spec,
        ),
        compiler_params=pltpu.CompilerParams(
            dimension_semantics=("parallel",)),
    )(x, *params)


# ------------------------- pure-JAX reference ------------------------------ #

def encoder_block_ref(x, params, *, n_heads, d_head, scale=True):
    (wq, bq, wk, bk, wv, bv, wo, bo,
     g1, be1, w1, b1, w2, b2, g2, be2) = params
    bs, seq, d_model = x.shape

    def ln(z, g, b, eps=1e-5):
        mu = jnp.mean(z, axis=-1, keepdims=True)
        var = jnp.mean((z - mu) ** 2, axis=-1, keepdims=True)
        return (z - mu) / jnp.sqrt(var + eps) * g + b

    q = x @ wq + bq
    k = x @ wk + bk
    v = x @ wv + bv

    def split(t):  # (bs, seq, H*dh) -> (bs, H, seq, dh)
        return t.reshape(bs, seq, n_heads, d_head).transpose(0, 2, 1, 3)

    qh, kh, vh = split(q), split(k), split(v)
    s = qh @ kh.transpose(0, 1, 3, 2)
    if scale:
        s = s / math.sqrt(d_head)
    p = jax.nn.softmax(s, axis=-1)
    av = (p @ vh).transpose(0, 2, 1, 3).reshape(bs, seq, n_heads * d_head)
    y1 = ln(x + (av @ wo + bo[0]), g1[0], be1[0])
    ff = jnp.maximum(y1 @ w1 + b1[0], 0.0) @ w2 + b2[0]
    return ln(y1 + ff, g2[0], be2[0])


# ------------------------------- main -------------------------------------- #

if __name__ == "__main__":
    # Small shapes consistent with EncoderBlock(n_heads, d_model, d_head, d_inner).
    bs, seq = 4, 8
    n_heads, d_model, d_head, d_inner = 4, 32, 8, 64
    hd = n_heads * d_head

    key = jax.random.PRNGKey(0)
    ks = jax.random.split(key, 16)
    f32 = jnp.float32

    def init(k, shape, fan_in):
        bound = 1.0 / math.sqrt(fan_in)
        return jax.random.uniform(k, shape, f32, -bound, bound)

    # Linear weights stored (in, out); biases stored (1, out) for 2-D VMEM tiles.
    wq = init(ks[0], (d_model, hd), d_model); bq = init(ks[1], (1, hd), d_model)
    wk = init(ks[2], (d_model, hd), d_model); bk = init(ks[3], (1, hd), d_model)
    wv = init(ks[4], (d_model, hd), d_model); bv = init(ks[5], (1, hd), d_model)
    wo = init(ks[6], (hd, d_model), hd);      bo = init(ks[7], (1, d_model), hd)
    g1 = jnp.ones((1, d_model), f32);         be1 = jnp.zeros((1, d_model), f32)
    w1 = init(ks[8], (d_model, d_inner), d_model); b1 = init(ks[9], (1, d_inner), d_model)
    w2 = init(ks[10], (d_inner, d_model), d_inner); b2 = init(ks[11], (1, d_model), d_inner)
    g2 = jnp.ones((1, d_model), f32);         be2 = jnp.zeros((1, d_model), f32)

    params = (wq, bq, wk, bk, wv, bv, wo, bo,
              g1, be1, w1, b1, w2, b2, g2, be2)

    x = jax.random.normal(ks[12], (bs, seq, d_model), f32)

    out = encoder_block(x, params, n_heads=n_heads, d_head=d_head, scale=True)
    out = jax.block_until_ready(out)

    ref = encoder_block_ref(x, params, n_heads=n_heads, d_head=d_head, scale=True)
    # Tolerance looser than f32 eps because the kernel uses the EUP approximate
    # reciprocal for the softmax denominator (per the performance review).
    np.testing.assert_allclose(np.asarray(out), np.asarray(ref),
                               rtol=2e-3, atol=2e-3)

    print("KERNEL_OK")
</pallas_src>

<mosaic_0001>
module attributes {stable_mosaic.version = 11 : i64} {
  func.func @encoder_block_kernel(%arg0: i32, %arg1: memref<2x8x32xf32, #tpu.memory_space<vmem>>, %arg2: memref<32x32xf32, #tpu.memory_space<vmem>>, %arg3: memref<1x32xf32, #tpu.memory_space<vmem>>, %arg4: memref<32x32xf32, #tpu.memory_space<vmem>>, %arg5: memref<1x32xf32, #tpu.memory_space<vmem>>, %arg6: memref<32x32xf32, #tpu.memory_space<vmem>>, %arg7: memref<1x32xf32, #tpu.memory_space<vmem>>, %arg8: memref<32x32xf32, #tpu.memory_space<vmem>>, %arg9: memref<1x32xf32, #tpu.memory_space<vmem>>, %arg10: memref<1x32xf32, #tpu.memory_space<vmem>>, %arg11: memref<1x32xf32, #tpu.memory_space<vmem>>, %arg12: memref<32x64xf32, #tpu.memory_space<vmem>>, %arg13: memref<1x64xf32, #tpu.memory_space<vmem>>, %arg14: memref<64x32xf32, #tpu.memory_space<vmem>>, %arg15: memref<1x32xf32, #tpu.memory_space<vmem>>, %arg16: memref<1x32xf32, #tpu.memory_space<vmem>>, %arg17: memref<1x32xf32, #tpu.memory_space<vmem>>, %arg18: memref<2x8x32xf32, #tpu.memory_space<vmem>>) attributes {dimension_semantics = [#tpu.dimension_semantics<parallel>], iteration_bounds = array<i64: 2>, scalar_prefetch = 0 : i64, scratch_operands = 0 : i64, tpu.core_type = #tpu.core_type<tc>, window_params = [{transform_indices = @transform_0, window_bounds = array<i64: 2, 8, 32>}, {pipeline_mode = #tpu.pipeline_mode<synchronous>, transform_indices = @transform_1, window_bounds = array<i64: 32, 32>}, {pipeline_mode = #tpu.pipeline_mode<synchronous>, transform_indices = @transform_2, window_bounds = array<i64: 1, 32>}, {pipeline_mode = #tpu.pipeline_mode<synchronous>, transform_indices = @transform_3, window_bounds = array<i64: 32, 32>}, {pipeline_mode = #tpu.pipeline_mode<synchronous>, transform_indices = @transform_4, window_bounds = array<i64: 1, 32>}, {pipeline_mode = #tpu.pipeline_mode<synchronous>, transform_indices = @transform_5, window_bounds = array<i64: 32, 32>}, {pipeline_mode = #tpu.pipeline_mode<synchronous>, transform_indices = @transform_6, window_bounds = array<i64: 1, 32>}, {pipeline_mode = #tpu.pipeline_mode<synchronous>, transform_indices = @transform_7, window_bounds = array<i64: 32, 32>}, {pipeline_mode = #tpu.pipeline_mode<synchronous>, transform_indices = @transform_8, window_bounds = array<i64: 1, 32>}, {pipeline_mode = #tpu.pipeline_mode<synchronous>, transform_indices = @transform_9, window_bounds = array<i64: 1, 32>}, {pipeline_mode = #tpu.pipeline_mode<synchronous>, transform_indices = @transform_10, window_bounds = array<i64: 1, 32>}, {pipeline_mode = #tpu.pipeline_mode<synchronous>, transform_indices = @transform_11, window_bounds = array<i64: 32, 64>}, {pipeline_mode = #tpu.pipeline_mode<synchronous>, transform_indices = @transform_12, window_bounds = array<i64: 1, 64>}, {pipeline_mode = #tpu.pipeline_mode<synchronous>, transform_indices = @transform_13, window_bounds = array<i64: 64, 32>}, {pipeline_mode = #tpu.pipeline_mode<synchronous>, transform_indices = @transform_14, window_bounds = array<i64: 1, 32>}, {pipeline_mode = #tpu.pipeline_mode<synchronous>, transform_indices = @transform_15, window_bounds = array<i64: 1, 32>}, {pipeline_mode = #tpu.pipeline_mode<synchronous>, transform_indices = @transform_16, window_bounds = array<i64: 1, 32>}, {transform_indices = @transform_17, window_bounds = array<i64: 2, 8, 32>}]} {
    %c0 = arith.constant 0 : index
    %c0_0 = arith.constant 0 : index
    %c0_1 = arith.constant 0 : index
    %0 = vector.load %arg1[%c0, %c0_0, %c0_1] : memref<2x8x32xf32, #tpu.memory_space<vmem>>, vector<2x8x32xf32>
    %1 = vector.shape_cast %0 : vector<2x8x32xf32> to vector<16x32xf32>
    %c0_2 = arith.constant 0 : index
    %c0_3 = arith.constant 0 : index
    %2 = vector.load %arg2[%c0_2, %c0_3] : memref<32x32xf32, #tpu.memory_space<vmem>>, vector<32x32xf32>
    %cst = arith.constant dense<0.000000e+00> : vector<16x32xf32>
    %3 = tpu.matmul %1, %2, %cst {dimension_numbers = #tpu.dot_dimension_numbers<[1], [0], [0], [1], [0, 0, 1, 1], [], []>} : vector<16x32xf32>, vector<32x32xf32>, vector<16x32xf32> -> vector<16x32xf32>
    %c0_4 = arith.constant 0 : index
    %c0_5 = arith.constant 0 : index
    %4 = vector.load %arg3[%c0_4, %c0_5] : memref<1x32xf32, #tpu.memory_space<vmem>>, vector<1x32xf32>
    %5 = vector.broadcast %4 : vector<1x32xf32> to vector<16x32xf32>
    %6 = arith.addf %3, %5 : vector<16x32xf32>
    %cst_6 = arith.constant 0.353553385 : f32
    %7 = vector.broadcast %cst_6 : f32 to vector<16x32xf32>
    %8 = arith.mulf %6, %7 : vector<16x32xf32>
    %c0_7 = arith.constant 0 : index
    %c0_8 = arith.constant 0 : index
    %9 = vector.load %arg4[%c0_7, %c0_8] : memref<32x32xf32, #tpu.memory_space<vmem>>, vector<32x32xf32>
    %cst_9 = arith.constant dense<0.000000e+00> : vector<16x32xf32>
    %10 = tpu.matmul %1, %9, %cst_9 {dimension_numbers = #tpu.dot_dimension_numbers<[1], [0], [0], [1], [0, 0, 1, 1], [], []>} : vector<16x32xf32>, vector<32x32xf32>, vector<16x32xf32> -> vector<16x32xf32>
    %c0_10 = arith.constant 0 : index
    %c0_11 = arith.constant 0 : index
    %11 = vector.load %arg5[%c0_10, %c0_11] : memref<1x32xf32, #tpu.memory_space<vmem>>, vector<1x32xf32>
    %12 = vector.broadcast %11 : vector<1x32xf32> to vector<16x32xf32>
    %13 = arith.addf %10, %12 : vector<16x32xf32>
    %c0_12 = arith.constant 0 : index
    %c0_13 = arith.constant 0 : index
    %14 = vector.load %arg6[%c0_12, %c0_13] : memref<32x32xf32, #tpu.memory_space<vmem>>, vector<32x32xf32>
    %cst_14 = arith.constant dense<0.000000e+00> : vector<16x32xf32>
    %15 = tpu.matmul %1, %14, %cst_14 {dimension_numbers = #tpu.dot_dimension_numbers<[1], [0], [0], [1], [0, 0, 1, 1], [], []>} : vector<16x32xf32>, vector<32x32xf32>, vector<16x32xf32> -> vector<16x32xf32>
    %c0_15 = arith.constant 0 : index
    %c0_16 = arith.constant 0 : index
    %16 = vector.load %arg7[%c0_15, %c0_16] : memref<1x32xf32, #tpu.memory_space<vmem>>, vector<1x32xf32>
    %17 = vector.broadcast %16 : vector<1x32xf32> to vector<16x32xf32>
    %18 = arith.addf %15, %17 : vector<16x32xf32>
    %19 = vector.extract_strided_slice %8 {offsets = [0, 0], sizes = [16, 8], strides = [1, 1]} : vector<16x32xf32> to vector<16x8xf32>
    %20 = vector.shape_cast %19 : vector<16x8xf32> to vector<2x8x8xf32>
    %21 = vector.extract_strided_slice %13 {offsets = [0, 0], sizes = [16, 8], strides = [1, 1]} : vector<16x32xf32> to vector<16x8xf32>
    %22 = vector.shape_cast %21 : vector<16x8xf32> to vector<2x8x8xf32>
    %23 = vector.extract_strided_slice %18 {offsets = [0, 0], sizes = [16, 8], strides = [1, 1]} : vector<16x32xf32> to vector<16x8xf32>
    %24 = vector.shape_cast %23 : vector<16x8xf32> to vector<2x8x8xf32>
    "tpu.trace_start"() <{level = 10 : i32, message = "bqd,bkd->bqk"}> : () -> ()
    %cst_17 = arith.constant dense<0.000000e+00> : vector<2x8x8xf32>
    %25 = tpu.matmul %20, %22, %cst_17 {dimension_numbers = #tpu.dot_dimension_numbers<[2], [2], [1], [1], [0, 0, 0, 1, 1, 1], [0], [0]>} : vector<2x8x8xf32>, vector<2x8x8xf32>, vector<2x8x8xf32> -> vector<2x8x8xf32>
    "tpu.trace_stop"() : () -> ()
    %cst_18 = arith.constant dense<0xFF800000> : vector<2x8xf32>
    %26 = vector.multi_reduction <maximumf>, %25, %cst_18 [2] : vector<2x8x8xf32> to vector<2x8xf32>
    %27 = vector.shape_cast %26 : vector<2x8xf32> to vector<2x8x1xf32>
    %28 = vector.broadcast %27 : vector<2x8x1xf32> to vector<2x8x8xf32>
    %29 = arith.subf %25, %28 : vector<2x8x8xf32>
    %30 = math.exp %29 : vector<2x8x8xf32>
    %cst_19 = arith.constant dense<0.000000e+00> : vector<2x8xf32>
    %31 = vector.multi_reduction <add>, %30, %cst_19 [2] : vector<2x8x8xf32> to vector<2x8xf32>
    %32 = vector.shape_cast %31 : vector<2x8xf32> to vector<2x8x1xf32>
    %33 = tpu.reciprocal %32 {approx = true} : vector<2x8x1xf32> -> vector<2x8x1xf32>
    %34 = vector.broadcast %33 : vector<2x8x1xf32> to vector<2x8x8xf32>
    %35 = arith.mulf %30, %34 : vector<2x8x8xf32>
    "tpu.trace_start"() <{level = 10 : i32, message = "bqk,bkd->bqd"}> : () -> ()
    %cst_20 = arith.constant dense<0.000000e+00> : vector<2x8x8xf32>
    %36 = tpu.matmul %35, %24, %cst_20 {dimension_numbers = #tpu.dot_dimension_numbers<[2], [1], [1], [2], [0, 0, 0, 1, 1, 2], [0], [0]>} : vector<2x8x8xf32>, vector<2x8x8xf32>, vector<2x8x8xf32> -> vector<2x8x8xf32>
    "tpu.trace_stop"() : () -> ()
    %37 = vector.shape_cast %36 : vector<2x8x8xf32> to vector<16x8xf32>
    %38 = vector.extract_strided_slice %8 {offsets = [0, 8], sizes = [16, 8], strides = [1, 1]} : vector<16x32xf32> to vector<16x8xf32>
    %39 = vector.shape_cast %38 : vector<16x8xf32> to vector<2x8x8xf32>
    %40 = vector.extract_strided_slice %13 {offsets = [0, 8], sizes = [16, 8], strides = [1, 1]} : vector<16x32xf32> to vector<16x8xf32>
    %41 = vector.shape_cast %40 : vector<16x8xf32> to vector<2x8x8xf32>
    %42 = vector.extract_strided_slice %18 {offsets = [0, 8], sizes = [16, 8], strides = [1, 1]} : vector<16x32xf32> to vector<16x8xf32>
    %43 = vector.shape_cast %42 : vector<16x8xf32> to vector<2x8x8xf32>
    "tpu.trace_start"() <{level = 10 : i32, message = "bqd,bkd->bqk"}> : () -> ()
    %cst_21 = arith.constant dense<0.000000e+00> : vector<2x8x8xf32>
    %44 = tpu.matmul %39, %41, %cst_21 {dimension_numbers = #tpu.dot_dimension_numbers<[2], [2], [1], [1], [0, 0, 0, 1, 1, 1], [0], [0]>} : vector<2x8x8xf32>, vector<2x8x8xf32>, vector<2x8x8xf32> -> vector<2x8x8xf32>
    "tpu.trace_stop"() : () -> ()
    %cst_22 = arith.constant dense<0xFF800000> : vector<2x8xf32>
    %45 = vector.multi_reduction <maximumf>, %44, %cst_22 [2] : vector<2x8x8xf32> to vector<2x8xf32>
    %46 = vector.shape_cast %45 : vector<2x8xf32> to vector<2x8x1xf32>
    %47 = vector.broadcast %46 : vector<2x8x1xf32> to vector<2x8x8xf32>
    %48 = arith.subf %44, %47 : vector<2x8x8xf32>
    %49 = math.exp %48 : vector<2x8x8xf32>
    %cst_23 = arith.constant dense<0.000000e+00> : vector<2x8xf32>
    %50 = vector.multi_reduction <add>, %49, %cst_23 [2] : vector<2x8x8xf32> to vector<2x8xf32>
    %51 = vector.shape_cast %50 : vector<2x8xf32> to vector<2x8x1xf32>
    %52 = tpu.reciprocal %51 {approx = true} : vector<2x8x1xf32> -> vector<2x8x1xf32>
    %53 = vector.broadcast %52 : vector<2x8x1xf32> to vector<2x8x8xf32>
    %54 = arith.mulf %49, %53 : vector<2x8x8xf32>
    "tpu.trace_start"() <{level = 10 : i32, message = "bqk,bkd->bqd"}> : () -> ()
    %cst_24 = arith.constant dense<0.000000e+00> : vector<2x8x8xf32>
    %55 = tpu.matmul %54, %43, %cst_24 {dimension_numbers = #tpu.dot_dimension_numbers<[2], [1], [1], [2], [0, 0, 0, 1, 1, 2], [0], [0]>} : vector<2x8x8xf32>, vector<2x8x8xf32>, vector<2x8x8xf32> -> vector<2x8x8xf32>
    "tpu.trace_stop"() : () -> ()
    %56 = vector.shape_cast %55 : vector<2x8x8xf32> to vector<16x8xf32>
    %57 = vector.extract_strided_slice %8 {offsets = [0, 16], sizes = [16, 8], strides = [1, 1]} : vector<16x32xf32> to vector<16x8xf32>
    %58 = vector.shape_cast %57 : vector<16x8xf32> to vector<2x8x8xf32>
    %59 = vector.extract_strided_slice %13 {offsets = [0, 16], sizes = [16, 8], strides = [1, 1]} : vector<16x32xf32> to vector<16x8xf32>
    %60 = vector.shape_cast %59 : vector<16x8xf32> to vector<2x8x8xf32>
    %61 = vector.extract_strided_slice %18 {offsets = [0, 16], sizes = [16, 8], strides = [1, 1]} : vector<16x32xf32> to vector<16x8xf32>
    %62 = vector.shape_cast %61 : vector<16x8xf32> to vector<2x8x8xf32>
    "tpu.trace_start"() <{level = 10 : i32, message = "bqd,bkd->bqk"}> : () -> ()
    %cst_25 = arith.constant dense<0.000000e+00> : vector<2x8x8xf32>
    %63 = tpu.matmul %58, %60, %cst_25 {dimension_numbers = #tpu.dot_dimension_numbers<[2], [2], [1], [1], [0, 0, 0, 1, 1, 1], [0], [0]>} : vector<2x8x8xf32>, vector<2x8x8xf32>, vector<2x8x8xf32> -> vector<2x8x8xf32>
    "tpu.trace_stop"() : () -> ()
    %cst_26 = arith.constant dense<0xFF800000> : vector<2x8xf32>
    %64 = vector.multi_reduction <maximumf>, %63, %cst_26 [2] : vector<2x8x8xf32> to vector<2x8xf32>
    %65 = vector.shape_cast %64 : vector<2x8xf32> to vector<2x8x1xf32>
    %66 = vector.broadcast %65 : vector<2x8x1xf32> to vector<2x8x8xf32>
    %67 = arith.subf %63, %66 : vector<2x8x8xf32>
    %68 = math.exp %67 : vector<2x8x8xf32>
    %cst_27 = arith.constant dense<0.000000e+00> : vector<2x8xf32>
    %69 = vector.multi_reduction <add>, %68, %cst_27 [2] : vector<2x8x8xf32> to vector<2x8xf32>
    %70 = vector.shape_cast %69 : vector<2x8xf32> to vector<2x8x1xf32>
    %71 = tpu.reciprocal %70 {approx = true} : vector<2x8x1xf32> -> vector<2x8x1xf32>
    %72 = vector.broadcast %71 : vector<2x8x1xf32> to vector<2x8x8xf32>
    %73 = arith.mulf %68, %72 : vector<2x8x8xf32>
    "tpu.trace_start"() <{level = 10 : i32, message = "bqk,bkd->bqd"}> : () -> ()
    %cst_28 = arith.constant dense<0.000000e+00> : vector<2x8x8xf32>
    %74 = tpu.matmul %73, %62, %cst_28 {dimension_numbers = #tpu.dot_dimension_numbers<[2], [1], [1], [2], [0, 0, 0, 1, 1, 2], [0], [0]>} : vector<2x8x8xf32>, vector<2x8x8xf32>, vector<2x8x8xf32> -> vector<2x8x8xf32>
    "tpu.trace_stop"() : () -> ()
    %75 = vector.shape_cast %74 : vector<2x8x8xf32> to vector<16x8xf32>
    %76 = vector.extract_strided_slice %8 {offsets = [0, 24], sizes = [16, 8], strides = [1, 1]} : vector<16x32xf32> to vector<16x8xf32>
    %77 = vector.shape_cast %76 : vector<16x8xf32> to vector<2x8x8xf32>
    %78 = vector.extract_strided_slice %13 {offsets = [0, 24], sizes = [16, 8], strides = [1, 1]} : vector<16x32xf32> to vector<16x8xf32>
    %79 = vector.shape_cast %78 : vector<16x8xf32> to vector<2x8x8xf32>
    %80 = vector.extract_strided_slice %18 {offsets = [0, 24], sizes = [16, 8], strides = [1, 1]} : vector<16x32xf32> to vector<16x8xf32>
    %81 = vector.shape_cast %80 : vector<16x8xf32> to vector<2x8x8xf32>
    "tpu.trace_start"() <{level = 10 : i32, message = "bqd,bkd->bqk"}> : () -> ()
    %cst_29 = arith.constant dense<0.000000e+00> : vector<2x8x8xf32>
    %82 = tpu.matmul %77, %79, %cst_29 {dimension_numbers = #tpu.dot_dimension_numbers<[2], [2], [1], [1], [0, 0, 0, 1, 1, 1], [0], [0]>} : vector<2x8x8xf32>, vector<2x8x8xf32>, vector<2x8x8xf32> -> vector<2x8x8xf32>
    "tpu.trace_stop"() : () -> ()
    %cst_30 = arith.constant dense<0xFF800000> : vector<2x8xf32>
    %83 = vector.multi_reduction <maximumf>, %82, %cst_30 [2] : vector<2x8x8xf32> to vector<2x8xf32>
    %84 = vector.shape_cast %83 : vector<2x8xf32> to vector<2x8x1xf32>
    %85 = vector.broadcast %84 : vector<2x8x1xf32> to vector<2x8x8xf32>
    %86 = arith.subf %82, %85 : vector<2x8x8xf32>
    %87 = math.exp %86 : vector<2x8x8xf32>
    %cst_31 = arith.constant dense<0.000000e+00> : vector<2x8xf32>
    %88 = vector.multi_reduction <add>, %87, %cst_31 [2] : vector<2x8x8xf32> to vector<2x8xf32>
    %89 = vector.shape_cast %88 : vector<2x8xf32> to vector<2x8x1xf32>
    %90 = tpu.reciprocal %89 {approx = true} : vector<2x8x1xf32> -> vector<2x8x1xf32>
    %91 = vector.broadcast %90 : vector<2x8x1xf32> to vector<2x8x8xf32>
    %92 = arith.mulf %87, %91 : vector<2x8x8xf32>
    "tpu.trace_start"() <{level = 10 : i32, message = "bqk,bkd->bqd"}> : () -> ()
    %cst_32 = arith.constant dense<0.000000e+00> : vector<2x8x8xf32>
    %93 = tpu.matmul %92, %81, %cst_32 {dimension_numbers = #tpu.dot_dimension_numbers<[2], [1], [1], [2], [0, 0, 0, 1, 1, 2], [0], [0]>} : vector<2x8x8xf32>, vector<2x8x8xf32>, vector<2x8x8xf32> -> vector<2x8x8xf32>
    "tpu.trace_stop"() : () -> ()
    %94 = vector.shape_cast %93 : vector<2x8x8xf32> to vector<16x8xf32>
    %95 = tpu.concatenate %37, %56, %75, %94 in 1 : vector<16x8xf32>, vector<16x8xf32>, vector<16x8xf32>, vector<16x8xf32> -> vector<16x32xf32>
    %c0_33 = arith.constant 0 : index
    %c0_34 = arith.constant 0 : index
    %96 = vector.load %arg8[%c0_33, %c0_34] : memref<32x32xf32, #tpu.memory_space<vmem>>, vector<32x32xf32>
    %cst_35 = arith.constant dense<0.000000e+00> : vector<16x32xf32>
    %97 = tpu.matmul %95, %96, %cst_35 {dimension_numbers = #tpu.dot_dimension_numbers<[1], [0], [0], [1], [0, 0, 1, 1], [], []>} : vector<16x32xf32>, vector<32x32xf32>, vector<16x32xf32> -> vector<16x32xf32>
    %c0_36 = arith.constant 0 : index
    %c0_37 = arith.constant 0 : index
    %98 = vector.load %arg9[%c0_36, %c0_37] : memref<1x32xf32, #tpu.memory_space<vmem>>, vector<1x32xf32>
    %99 = vector.broadcast %98 : vector<1x32xf32> to vector<16x32xf32>
    %100 = arith.addf %97, %99 : vector<16x32xf32>
    %101 = arith.addf %1, %100 : vector<16x32xf32>
    %c0_38 = arith.constant 0 : index
    %c0_39 = arith.constant 0 : index
    %102 = vector.load %arg10[%c0_38, %c0_39] : memref<1x32xf32, #tpu.memory_space<vmem>>, vector<1x32xf32>
    %c0_40 = arith.constant 0 : index
    %c0_41 = arith.constant 0 : index
    %103 = vector.load %arg11[%c0_40, %c0_41] : memref<1x32xf32, #tpu.memory_space<vmem>>, vector<1x32xf32>
    %cst_42 = arith.constant dense<0.000000e+00> : vector<16xf32>
    %104 = vector.multi_reduction <add>, %101, %cst_42 [1] : vector<16x32xf32> to vector<16xf32>
    %105 = vector.shape_cast %104 : vector<16xf32> to vector<16x1xf32>
    %cst_43 = arith.constant 3.200000e+01 : f32
    %106 = vector.broadcast %cst_43 : f32 to vector<16x1xf32>
    %107 = arith.divf %105, %106 : vector<16x1xf32>
    %108 = vector.broadcast %107 : vector<16x1xf32> to vector<16x32xf32>
    %109 = arith.subf %101, %108 : vector<16x32xf32>
    %110 = arith.mulf %109, %109 : vector<16x32xf32>
    %cst_44 = arith.constant dense<0.000000e+00> : vector<16xf32>
    %111 = vector.multi_reduction <add>, %110, %cst_44 [1] : vector<16x32xf32> to vector<16xf32>
    %112 = vector.shape_cast %111 : vector<16xf32> to vector<16x1xf32>
    %cst_45 = arith.constant 3.200000e+01 : f32
    %113 = vector.broadcast %cst_45 : f32 to vector<16x1xf32>
    %114 = arith.divf %112, %113 : vector<16x1xf32>
    %cst_46 = arith.constant 9.99999974E-6 : f32
    %115 = vector.broadcast %cst_46 : f32 to vector<16x1xf32>
    %116 = arith.addf %114, %115 : vector<16x1xf32>
    %117 = math.rsqrt %116 : vector<16x1xf32>
    %118 = vector.broadcast %117 : vector<16x1xf32> to vector<16x32xf32>
    %119 = arith.mulf %109, %118 : vector<16x32xf32>
    %120 = vector.broadcast %102 : vector<1x32xf32> to vector<16x32xf32>
    %121 = arith.mulf %119, %120 : vector<16x32xf32>
    %122 = vector.broadcast %103 : vector<1x32xf32> to vector<16x32xf32>
    %123 = arith.addf %121, %122 : vector<16x32xf32>
    %c0_47 = arith.constant 0 : index
    %c0_48 = arith.constant 0 : index
    %124 = vector.load %arg12[%c0_47, %c0_48] : memref<32x64xf32, #tpu.memory_space<vmem>>, vector<32x64xf32>
    %cst_49 = arith.constant dense<0.000000e+00> : vector<16x64xf32>
    %125 = tpu.matmul %123, %124, %cst_49 {dimension_numbers = #tpu.dot_dimension_numbers<[1], [0], [0], [1], [0, 0, 1, 1], [], []>} : vector<16x32xf32>, vector<32x64xf32>, vector<16x64xf32> -> vector<16x64xf32>
    %c0_50 = arith.constant 0 : index
    %c0_51 = arith.constant 0 : index
    %126 = vector.load %arg13[%c0_50, %c0_51] : memref<1x64xf32, #tpu.memory_space<vmem>>, vector<1x64xf32>
    %127 = vector.broadcast %126 : vector<1x64xf32> to vector<16x64xf32>
    %128 = arith.addf %125, %127 : vector<16x64xf32>
    %cst_52 = arith.constant 0.000000e+00 : f32
    %129 = vector.broadcast %cst_52 : f32 to vector<16x64xf32>
    %130 = arith.maximumf %128, %129 : vector<16x64xf32>
    %c0_53 = arith.constant 0 : index
    %c0_54 = arith.constant 0 : index
    %131 = vector.load %arg14[%c0_53, %c0_54] : memref<64x32xf32, #tpu.memory_space<vmem>>, vector<64x32xf32>
    %cst_55 = arith.constant dense<0.000000e+00> : vector<16x32xf32>
    %132 = tpu.matmul %130, %131, %cst_55 {dimension_numbers = #tpu.dot_dimension_numbers<[1], [0], [0], [1], [0, 0, 1, 1], [], []>} : vector<16x64xf32>, vector<64x32xf32>, vector<16x32xf32> -> vector<16x32xf32>
    %c0_56 = arith.constant 0 : index
    %c0_57 = arith.constant 0 : index
    %133 = vector.load %arg15[%c0_56, %c0_57] : memref<1x32xf32, #tpu.memory_space<vmem>>, vector<1x32xf32>
    %134 = vector.broadcast %133 : vector<1x32xf32> to vector<16x32xf32>
    %135 = arith.addf %132, %134 : vector<16x32xf32>
    %136 = arith.addf %123, %135 : vector<16x32xf32>
    %c0_58 = arith.constant 0 : index
    %c0_59 = arith.constant 0 : index
    %137 = vector.load %arg16[%c0_58, %c0_59] : memref<1x32xf32, #tpu.memory_space<vmem>>, vector<1x32xf32>
    %c0_60 = arith.constant 0 : index
    %c0_61 = arith.constant 0 : index
    %138 = vector.load %arg17[%c0_60, %c0_61] : memref<1x32xf32, #tpu.memory_space<vmem>>, vector<1x32xf32>
    %cst_62 = arith.constant dense<0.000000e+00> : vector<16xf32>
    %139 = vector.multi_reduction <add>, %136, %cst_62 [1] : vector<16x32xf32> to vector<16xf32>
    %140 = vector.shape_cast %139 : vector<16xf32> to vector<16x1xf32>
    %cst_63 = arith.constant 3.200000e+01 : f32
    %141 = vector.broadcast %cst_63 : f32 to vector<16x1xf32>
    %142 = arith.divf %140, %141 : vector<16x1xf32>
    %143 = vector.broadcast %142 : vector<16x1xf32> to vector<16x32xf32>
    %144 = arith.subf %136, %143 : vector<16x32xf32>
    %145 = arith.mulf %144, %144 : vector<16x32xf32>
    %cst_64 = arith.constant dense<0.000000e+00> : vector<16xf32>
    %146 = vector.multi_reduction <add>, %145, %cst_64 [1] : vector<16x32xf32> to vector<16xf32>
    %147 = vector.shape_cast %146 : vector<16xf32> to vector<16x1xf32>
    %cst_65 = arith.constant 3.200000e+01 : f32
    %148 = vector.broadcast %cst_65 : f32 to vector<16x1xf32>
    %149 = arith.divf %147, %148 : vector<16x1xf32>
    %cst_66 = arith.constant 9.99999974E-6 : f32
    %150 = vector.broadcast %cst_66 : f32 to vector<16x1xf32>
    %151 = arith.addf %149, %150 : vector<16x1xf32>
    %152 = math.rsqrt %151 : vector<16x1xf32>
    %153 = vector.broadcast %152 : vector<16x1xf32> to vector<16x32xf32>
    %154 = arith.mulf %144, %153 : vector<16x32xf32>
    %155 = vector.broadcast %137 : vector<1x32xf32> to vector<16x32xf32>
    %156 = arith.mulf %154, %155 : vector<16x32xf32>
    %157 = vector.broadcast %138 : vector<1x32xf32> to vector<16x32xf32>
    %158 = arith.addf %156, %157 : vector<16x32xf32>
    %159 = vector.shape_cast %158 : vector<16x32xf32> to vector<2x8x32xf32>
    %c0_67 = arith.constant 0 : index
    %c0_68 = arith.constant 0 : index
    %c0_69 = arith.constant 0 : index
    %160 = vector.load %arg18[%c0_67, %c0_68, %c0_69] : memref<2x8x32xf32, #tpu.memory_space<vmem>>, vector<2x8x32xf32>
    tpu.vector_store %arg18[%c0_67, %c0_68, %c0_69], %159 {strides = array<i32>} : memref<2x8x32xf32, #tpu.memory_space<vmem>>, vector<2x8x32xf32>,
    return
  }
  func.func @transform_0(%arg0: i32) -> (i32, i32, i32) {
    %c0_i32 = arith.constant 0 : i32
    %c0_i32_0 = arith.constant 0 : i32
    %c0_i32_1 = arith.constant 0 : i32
    return %arg0, %c0_i32, %c0_i32_0 : i32, i32, i32
  }
  func.func @transform_1(%arg0: i32) -> (i32, i32) {
    %c0_i32 = arith.constant 0 : i32
    %c0_i32_0 = arith.constant 0 : i32
    %c0_i32_1 = arith.constant 0 : i32
    return %c0_i32, %c0_i32_0 : i32, i32
  }
  func.func @transform_2(%arg0: i32) -> (i32, i32) {
    %c0_i32 = arith.constant 0 : i32
    %c0_i32_0 = arith.constant 0 : i32
    %c0_i32_1 = arith.constant 0 : i32
    return %c0_i32, %c0_i32_0 : i32, i32
  }
  func.func @transform_3(%arg0: i32) -> (i32, i32) {
    %c0_i32 = arith.constant 0 : i32
    %c0_i32_0 = arith.constant 0 : i32
    %c0_i32_1 = arith.constant 0 : i32
    return %c0_i32, %c0_i32_0 : i32, i32
  }
  func.func @transform_4(%arg0: i32) -> (i32, i32) {
    %c0_i32 = arith.constant 0 : i32
    %c0_i32_0 = arith.constant 0 : i32
    %c0_i32_1 = arith.constant 0 : i32
    return %c0_i32, %c0_i32_0 : i32, i32
  }
  func.func @transform_5(%arg0: i32) -> (i32, i32) {
    %c0_i32 = arith.constant 0 : i32
    %c0_i32_0 = arith.constant 0 : i32
    %c0_i32_1 = arith.constant 0 : i32
    return %c0_i32, %c0_i32_0 : i32, i32
  }
  func.func @transform_6(%arg0: i32) -> (i32, i32) {
    %c0_i32 = arith.constant 0 : i32
    %c0_i32_0 = arith.constant 0 : i32
    %c0_i32_1 = arith.constant 0 : i32
    return %c0_i32, %c0_i32_0 : i32, i32
  }
  func.func @transform_7(%arg0: i32) -> (i32, i32) {
    %c0_i32 = arith.constant 0 : i32
    %c0_i32_0 = arith.constant 0 : i32
    %c0_i32_1 = arith.constant 0 : i32
    return %c0_i32, %c0_i32_0 : i32, i32
  }
  func.func @transform_8(%arg0: i32) -> (i32, i32) {
    %c0_i32 = arith.constant 0 : i32
    %c0_i32_0 = arith.constant 0 : i32
    %c0_i32_1 = arith.constant 0 : i32
    return %c0_i32, %c0_i32_0 : i32, i32
  }
  func.func @transform_9(%arg0: i32) -> (i32, i32) {
    %c0_i32 = arith.constant 0 : i32
    %c0_i32_0 = arith.constant 0 : i32
    %c0_i32_1 = arith.constant 0 : i32
    return %c0_i32, %c0_i32_0 : i32, i32
  }
  func.func @transform_10(%arg0: i32) -> (i32, i32) {
    %c0_i32 = arith.constant 0 : i32
    %c0_i32_0 = arith.constant 0 : i32
    %c0_i32_1 = arith.constant 0 : i32
    return %c0_i32, %c0_i32_0 : i32, i32
  }
  func.func @transform_11(%arg0: i32) -> (i32, i32) {
    %c0_i32 = arith.constant 0 : i32
    %c0_i32_0 = arith.constant 0 : i32
    %c0_i32_1 = arith.constant 0 : i32
    return %c0_i32, %c0_i32_0 : i32, i32
  }
  func.func @transform_12(%arg0: i32) -> (i32, i32) {
    %c0_i32 = arith.constant 0 : i32
    %c0_i32_0 = arith.constant 0 : i32
    %c0_i32_1 = arith.constant 0 : i32
    return %c0_i32, %c0_i32_0 : i32, i32
  }
  func.func @transform_13(%arg0: i32) -> (i32, i32) {
    %c0_i32 = arith.constant 0 : i32
    %c0_i32_0 = arith.constant 0 : i32
    %c0_i32_1 = arith.constant 0 : i32
    return %c0_i32, %c0_i32_0 : i32, i32
  }
  func.func @transform_14(%arg0: i32) -> (i32, i32) {
    %c0_i32 = arith.constant 0 : i32
    %c0_i32_0 = arith.constant 0 : i32
    %c0_i32_1 = arith.constant 0 : i32
    return %c0_i32, %c0_i32_0 : i32, i32
  }
  func.func @transform_15(%arg0: i32) -> (i32, i32) {
    %c0_i32 = arith.constant 0 : i32
    %c0_i32_0 = arith.constant 0 : i32
    %c0_i32_1 = arith.constant 0 : i32
    return %c0_i32, %c0_i32_0 : i32, i32
  }
  func.func @transform_16(%arg0: i32) -> (i32, i32) {
    %c0_i32 = arith.constant 0 : i32
    %c0_i32_0 = arith.constant 0 : i32
    %c0_i32_1 = arith.constant 0 : i32
    return %c0_i32, %c0_i32_0 : i32, i32
  }
  func.func @transform_17(%arg0: i32) -> (i32, i32, i32) {
    %c0_i32 = arith.constant 0 : i32
    %c0_i32_0 = arith.constant 0 : i32
    %c0_i32_1 = arith.constant 0 : i32
    return %arg0, %c0_i32, %c0_i32_0 : i32, i32, i32
  }
}

</mosaic_0001>

<bundles_post_ra>
// kernel: tpu_custom_call.1
= control target key start
LH: loop header
LB: loop body
LE: loop exit
PB: predicated region body
PF: predicated region fallthrough
CT: control target
= control target key end

     0   :  { %s2378_s0 = inlined_call_operand.vmem [shape: f32[4,8,32], index: 0, kind: input, shape index: {}]   ;;  %s2379_s1 = inlined_call_operand.vmem [shape: f32[32,32], index: 1, kind: input, shape index: {}]   ;;  %s2380_s2 = inlined_call_operand.vmem [shape: f32[1,32], index: 2, kind: input, shape index: {}]   ;;  %s2381_s3 = inlined_call_operand.vmem [shape: f32[32,32], index: 3, kind: input, shape index: {}]   ;;  %s2382_s4 = inlined_call_operand.vmem [shape: f32[1,32], index: 4, kind: input, shape index: {}]   ;;  %s2383_s5 = inlined_call_operand.hbm [shape: f32[32,32], index: 5, kind: input, shape index: {}]   ;;  %s2384_s6 = inlined_call_operand.vmem [shape: f32[1,32], index: 6, kind: input, shape index: {}]   ;;  %s2385_s7 = inlined_call_operand.hbm [shape: f32[32,32], index: 7, kind: input, shape index: {}]   ;;  %s2386_s8 = inlined_call_operand.vmem [shape: f32[1,32], index: 8, kind: input, shape index: {}]   ;;  %s2387_s9 = inlined_call_operand.vmem [shape: f32[1,32], index: 9, kind: input, shape index: {}]   ;;  %s2388_s10 = inlined_call_operand.vmem [shape: f32[1,32], index: 10, kind: input, shape index: {}]   ;;  %s2389_s11 = inlined_call_operand.hbm [shape: f32[32,64], index: 11, kind: input, shape index: {}]   ;;  %s2390_s12 = inlined_call_operand.vmem [shape: f32[1,64], index: 12, kind: input, shape index: {}]   ;;  %s2391_s13 = inlined_call_operand.vmem [shape: f32[64,32], index: 13, kind: input, shape index: {}]   ;;  %s2392_s14 = inlined_call_operand.vmem [shape: f32[1,32], index: 14, kind: input, shape index: {}]   ;;  %s2393_s15 = inlined_call_operand.vmem [shape: f32[1,32], index: 15, kind: input, shape index: {}]   ;;  %s2394_s16 = inlined_call_operand.vmem [shape: f32[1,32], index: 16, kind: input, shape index: {}]   ;;  %s2395_s17 = inlined_call_operand.hbm [shape: f32[4,8,32], index: 17, kind: output, shape index: {}]  }
   0x1   :  { %2405 = sst [smem:[#allocation19_spill]] %s2378_s0 }
   0x2   :  { %2406 = sst [smem:[#allocation20_spill]] %s2379_s1 }
   0x3   :  { %2407 = sst [smem:[#allocation21_spill]] %s2380_s2 }
   0x4   :  { %2408 = sst [smem:[#allocation22_spill]] %s2383_s5 }
   0x5   :  { %2409 = sst [smem:[#allocation23_spill]] %s2385_s7 }
   0x6   :  { %22 = vsyncpa [#allocation3], 0 }
   0x7   :  { %23 = vsyncpa [#allocation6], 0 }
   0x8   :  { %24 = vsyncpa [#allocation4], 0 }
   0x9   :  { %26 = vsyncpa [#allocation4 + $0x1], 0  ;;  %s2058_s24 = smov 0   ;;  %s2060_s25 = smov 0  }
   0xa   :  { %s2062_s26 = smov 0   ;;  %s2064_s27 = smov 0  }
   0xb LB: > { %2410 = sst [smem:[#allocation12_spill]] %s1941_s24  ;;  %s2079_s28 = sadd.s32 4294967295, %s1953_s27   ;;  %s1953_s27 = sphi %s2064_s27, %s2430_s27   ;;  %s1949_s26 = sphi %s2062_s26, %s2432_s26   ;;  %s1945_s25 = sphi %s2060_s25, %s2434_s25   ;;  %s1941_s24 = sphi %s2058_s24, %s2433_s24  }
   0xc   : > { %2411 = sst [smem:[#allocation13_spill]] %s1949_s26  ;;  %s1601_s29 = sadd.s32 4294967294, %s1953_s27  }
   0xd   : > { %2412 = sst [smem:[#allocation14_spill]] %s1953_s27  ;;  %s2083_s0 = sadd.s32 1, %s1953_s27  }
   0xe   : > { %2413 = sst [smem:[#allocation15_spill]] %s2083_s0  ;;  %s401_s30 = sadd.s32 1, %s1949_s26 }
   0xf   : > { %s398_s18 = ssub.s32 %s1953_s27, %s2083_s0  ;;  %p411_p0 = scmp.ne.s32.totalorder %s1949_s26, %s1945_s25 }
  0x10   : > { %p399_p1 = scmp.eq.s32.totalorder %s398_s18, 0  ;;  %p412_p2 = scmp.eq.s32.totalorder %s2079_s28, 1 }
  0x11   : > { %p417_p3 = scmp.ne.s32.totalorder %s1945_s25, %s1941_s24  ;;  %p418_p4 = scmp.eq.s32.totalorder %s1601_s29, 1 }
  0x12   : > { %s2094_s19 = scalar_select %p399_p1, %s1949_s26, %s401_s30  }
  0x13   : > { %p2096_p5 = por %p412_p2, %p411_p0  ;;  %p2100_p6 = por %p418_p4, %p417_p3 }
  0x14   : > { %2414 = sst [smem:[#allocation16_spill]] %s2094_s19  ;;  %p1602_p7 = scmp.ge.s32.totalorder %s1953_s27, 1 }
  0x15   : > { %s2415_s1 = scalar_select %p2096_p5, 1, 0 }
  0x16   : > { %s2417_s20 = scalar_select %p2100_p6, 1, 0 }
  0x17   : > { %2416 = sst [smem:[#allocation17_spill]] %s2415_s1  ;;  %p425_p8 = scmp.lt.s32.totalorder %s1953_s27, 3 }
  0x18   : > { %2418 = sst [smem:[#allocation18_spill]] %s2417_s20  ;;  %p1684_p9 = scmp.eq.s32.totalorder %s2079_s28, 0 }
  0x19   : > { %p2107_p10 = pnand %p1602_p7, %p425_p8  ;;  %s2420_s7 = sld [smem:[#allocation23_spill]] }
  0x1a   : > { %s2421_s5 = sld [smem:[#allocation22_spill]]  ;;  %s1955_s0 = smov [#allocation5]  }
  0x1b   : > { %p1670_p11 = pneg %p2107_p10  ;;  %s467_s20 = sshll.u32 %s1955_s0, 4  ;;  %s468_s20 = int_to_ptr.vmem [resolvable:$true] %s467_s20 }
  0x1c   : > { %s1956_s22 = smov 128   ;;  %s1957_s23 = smov 8  }
  0x1d   : > { %p2121_p12 = pnand %p1684_p9, %p1670_p11  ;;  %s1959_s27 = smov [#allocation7]  }
  0x1e   : > { %s490_s1 = sshll.u32 %s1959_s27, 4  ;;  %s491_s1 = int_to_ptr.vmem [resolvable:$true] %s490_s1 }
  0x1f   : > { %s465_s29 = sshll.u32 %s2420_s7, 4  ;;  %s1958_s7 = smov [#allocation2]   ;;  %s466_s29 = int_to_ptr.hbm [resolvable:$true] %s465_s29 }
  0x20   : > { %s448_s19 = sshll.u32 %s2421_s5, 4  ;;  %s450_s24 = sshll.u32 %s1958_s7, 4  ;;  %s449_s19 = int_to_ptr.hbm [resolvable:$true] %s448_s19  ;;  %s451_s24 = int_to_ptr.vmem [resolvable:$true] %s450_s24 }
  0x21   : > { %1676 = dma.hbm_to_vmem [thread:$0]  (!%p2121_p12), %s466_s29, 512, %s468_s20, [#allocation6], %s1956_s22, %s1956_s22, %s1957_s23  }
  0x22   : > { %s488_s5 = sshll.u32 %s2389_s11, 4  ;;  %530 = sbr.rel (%p2107_p10) target bundleno = 1932 (0x78c), region = 88  ;;  %s489_s5 = int_to_ptr.hbm [resolvable:$true] %s488_s5 }
  0x23   : > { %1673 = dma.hbm_to_vmem [thread:$0]  (!%p2121_p12), %s449_s19, 512, %s451_s24, [#allocation3], %s1956_s22, %s1956_s22, %s1957_s23  }
  0x24   : > { %1679 = dma.hbm_to_vmem [thread:$0]  (!%p2121_p12), %s489_s5, 512, %s491_s1, [#allocation6], %s1956_s22, %s1956_s22, %s1957_s23  }
  0x27   : > { %1928 = dma.done.wait (%p1684_p9), [#allocation3], 512  }
  0x28   : > { %1930 = vsyncadd (%p1684_p9), [#allocation3], 4294966784 }
  0x29   : > { %1932 = dma.done.wait (%p1684_p9), [#allocation6], 1024  }
  0x2a   : > { %1934 = vsyncadd (%p1684_p9), [#allocation6], 4294966272  ;;  %s1612_s7 = sshll.u32 %s2079_s28, 1  ;;  %v645_v0 = vld [vmem:[%s2381_s3 + $0x18] sm:$0xff]  ;;  %s2423_s19 = sld [smem:[#allocation20_spill]]  ;;  %v644_v2 = vld [vmem:[%s2381_s3 + $0x10] sm:$0xff] }
  0x2b   : > { %p594_p13 = scmp.lt.s32.totalorder %s1612_s7, 3  ;;  %s2424_s22 = sld [smem:[#allocation19_spill]]  ;;  %662 = vmatpush.msra.mxu1 %v645_v0  ;;  %v643_v4 = vld [vmem:[%s2381_s3 + $0x8] sm:$0xff]  ;;  %v642_v6 = vld [vmem:[%s2381_s3] sm:$0xff]  ;;  %vm610_vm0 = vcmask 261120   ;;  %v676_v12 = vld [vmem:[#allocation2 + $0x18] sm:$0xff] }
  0x2c   : > { %v1741_v10 = vld [vmem:[%s2382_s4] ss:$0 sm:$0xff]  ;;  %s2425_s2 = sld [smem:[#allocation21_spill]]  ;;  %693 = vmatpush.msra.mxu2 %v676_v12  ;;  %vm704_vm1 = vcmask 64512   ;;  %s1961_s18 = smov 120   ;;  %v675_v23 = vld [vmem:[#allocation2 + $0x10] sm:$0xff] }
  0x2d   : > { %s2436_s7 = smov (!%p594_p13, %s1612_s7), 3  ;;  %663 = vmatpush.msra.mxu1 %v644_v2  ;;  %v674_v24 = vld [vmem:[#allocation2 + $0x8] sm:$0xff]  ;;  %v673_v25 = vld [vmem:[#allocation2] sm:$0xff]  ;;  %s1963_s27 = smov 8   ;;  %vm1243_vm2 = vcmask 130048   ;;  %vm1246_vm3 = vcmask 195584  }
  0x2e   : > { %s1613_s5 = sshll.u32 %s2436_s7, 3  ;;  %s1962_s7 = smov 104   ;;  %694 = vmatpush.msra.mxu2 %v675_v23  ;;  %v1743_v42 = vld [vmem:[%s2384_s6] ss:$0 sm:$0xff]  ;;  %vm1402_vm11 = vcmask 523264  }
  0x2f   : > { %664 = vmatpush.msra.mxu1 %v643_v4  ;;  %s1964_s0 = smov 16   ;;  %s1965_s1 = smov 24  }
  0x30   : > { %v605_v1 = vld [vmem:[%s2423_s19 + $0x18] sm:$0xff]  ;;  %v604_v3 = vld [vmem:[%s2423_s19 + $0x10] sm:$0xff]  ;;  %v603_v5 = vld [vmem:[%s2423_s19 + $0x8] sm:$0xff]  ;;  %695 = vmatpush.msra.mxu2 %v674_v24 }
  0x31   : > { %s597_s23 = scalar_lea.vmem %s2424_s22, %s1613_s5  ;;  %629 = vmatpush.msra.mxu0 %v605_v1  ;;  %v602_v7 = vld [vmem:[%s2423_s19] sm:$0xff]  ;;  %665 = vmatpush.msra.mxu1 %v642_v6  ;;  %s590_s5 = sand.u32 1, %s1945_s25  }
  0x32   : > { %v2172_v8 = vld [vmem:[%s597_s23] sm:$0xff]  ;;  %v2178_v9 = vld [vmem:[%s597_s23 + $0x8] sm:$0xff]  ;;  %s1960_s23 = smov 112   ;;  %696 = vmatpush.msra.mxu2 %v673_v25  ;;  %s1611_s30 = sshll.u32 %s590_s5, 4 }
  0x33   : > { %630 = vmatpush.msra.mxu0 %v604_v3  ;;  %1616 = vmatmul.msk.f32.vlgmr.msra.gmra.mxu1 %vm610_vm0, %v2172_v8  ;;  %v1742_v11 = vld [vmem:[%s2425_s2] ss:$0 sm:$0xff] }
  0x34   : > { %1618 = vmatmul.msk.f32.vlgmr.msra.gmra.mxu2 %vm610_vm0, %v2172_v8 }
  0x35   : > { %631 = vmatpush.msra.mxu0 %v603_v5 }
  0x37   : > { %632 = vmatpush.msra.mxu0 %v602_v7 }
  0x38   : > { %1614 = vmatmul.msk.f32.vlgmr.msra.gmra.mxu0 %vm610_vm0, %v2172_v8 }
  0x3b   : > { %1617 = vmatmul.msk.f32.gmra.mxu1 %vm610_vm0, %v2178_v9 }
  0x3c   : > { %1619 = vmatmul.msk.f32.gmra.mxu2 %vm610_vm0, %v2178_v9 }
  0x40   : > { %1615 = vmatmul.msk.f32.gmra.mxu0 %vm610_vm0, %v2178_v9 }
  0xb0   : > { %v667_v13 = vpop.f32.mrf.mxu1 }
  0xb1   : > { %v668_v15 = vadd.f32 %v1741_v10, %v667_v13 }
  0xb3   : > { %959 = vrot.lane.b32.xlu1 %v668_v15, %s1960_s23  ;;  %827 = vrot.lane.b32.xlu0 %v668_v15, %s1961_s18 }
  0xb4   : > { %1620 = vmatpush.xpose.msk.msrb.mxu0 %vm704_vm1, %v668_v15 }
  0xb5   : > { %v634_v14 = vpop.f32.mrf.mxu0 }
  0xb6   : > { %v635_v16 = vadd.f32 %v1742_v11, %v634_v14 }
  0xb7   : > { %v698_v43 = vpop.f32.mrf.mxu2 }
  0xb8   : > { %v640_v17 = vmul.f32 0.35355338, %v635_v16  ;;  %v670_v18 = vpop.f32.mrf.mxu1  ;;  %v2227_v44 = vadd.f32 %v1743_v42, %v698_v43 }
  0xb9   : > { %v671_v20 = vadd.f32 %v1741_v10, %v670_v18 }
  0xba   : > { %957 = vrot.lane.b32.xlu2 %v640_v17, %s1960_s23  ;;  %1621 = vmatmul.msk.f32.vlgmr.msrb.gmra.mxu0 %vm704_vm1, %v640_v17 }
  0xbb   : > { %1622 = vmatpush.xpose.msk.msra.mxu3 %vm704_vm1, %v671_v20  ;;  %855 = vrot.lane.b32.xlu1 %v671_v20, %s1961_s18 }
  0xbc   : > { %825 = vrot.lane.b32.xlu0 %v640_v17, %s1961_s18 }
  0xbd   : > { %v637_v19 = vpop.f32.mrf.mxu0 }
  0xbe   : > { %v638_v21 = vadd.f32 %v1742_v11, %v637_v19 }
  0xbf   : > { %797 = vmatpush.msrb.mxu3 %v2227_v44  ;;  %v701_v45 = vpop.f32.mrf.mxu2 }
  0xc0   : > { %v641_v22 = vmul.f32 0.35355338, %v638_v21  ;;  %v2230_v46 = vadd.f32 %v1743_v42, %v701_v45 }
  0xc2   : > { %853 = vrot.lane.b32.xlu2 %v641_v22, %s1961_s18  ;;  %1623 = vmatmul.msk.f32.vlgmr.msra.gmra.mxu3 %vm704_vm1, %v641_v22 }
  0xc3   : > { %1089 = vrot.lane.b32.xlu1 %v668_v15, %s1962_s7  ;;  %820 = vmatpush.msra.mxu0 %v2230_v46 }
  0xc4   : > { %987 = vrot.lane.b32.xlu0 %v671_v20, %s1960_s23 }
  0xca   : > { %985 = vrot.lane.b32.xlu2 %v641_v22, %s1960_s23 }
  0xcb   : > { %1117 = vrot.lane.b32.xlu1 %v671_v20, %s1962_s7 }
  0xcc   : > { %1087 = vrot.lane.b32.xlu0 %v640_v17, %s1962_s7 }
  0xd2   : > { %1115 = vrot.lane.b32.xlu2 %v641_v22, %s1962_s7 }
 0x114   : > { %v958_v26 = vpop.permute.xlu2 %957 }
 0x11c   : > { %v854_v30 = vpop.permute.xlu2 %853 }
 0x124   : > { %v986_v36 = vpop.permute.xlu2 %985 }
 0x125   : > { %v960_v27 = vpop.permute.xlu1 %959  ;;  %v828_v28 = vpop.permute.xlu0 %827 }
 0x126   : > { %1626 = vmatpush.xpose.msk.msrb.mxu1 %vm704_vm1, %v828_v28 }
 0x12a   : > { %1632 = vmatpush.xpose.msk.msra.mxu1 %vm704_vm1, %v960_v27 }
 0x12c   : > { %v1116_v40 = vpop.permute.xlu2 %1115 }
 0x12d   : > { %v856_v29 = vpop.permute.xlu1 %855 }
 0x12e   : > { %v826_v31 = vpop.permute.xlu0 %825  ;;  %1628 = vmatpush.xpose.msk.msrb.mxu2 %vm704_vm1, %v856_v29 }
 0x12f   : > { %1627 = vmatmul.msk.f32.vlgmr.msrb.gmra.mxu1 %vm704_vm1, %v826_v31 }
 0x131   : > { %1629 = vmatmul.msk.f32.vlgmr.msrb.gmra.mxu2 %vm704_vm1, %v854_v30 }
 0x135   : > { %v1090_v33 = vpop.permute.xlu1 %1089 }
 0x136   : > { %v988_v35 = vpop.permute.xlu0 %987  ;;  %1638 = vmatpush.xpose.msk.msrb.mxu1 %vm704_vm1, %v1090_v33 }
 0x137   : > { %v728_v32 = vpop.f32.mrf.mxu0  ;;  %1633 = vmatmul.msk.f32.vlgmr.msra.gmra.mxu1 %vm704_vm1, %v958_v26  ;;  %1634 = vmatpush.xpose.msk.msra.mxu2 %vm704_vm1, %v988_v35 }
 0x138   : > { %v757_v34 = vsel %vm704_vm1, %v728_v32, -inf }
 0x139   : > { %758 = vmax.xlane.f32.xlu0 %v757_v34 }
 0x13a   : > { %1635 = vmatmul.msk.f32.vlgmr.msra.gmra.mxu2 %vm704_vm1, %v986_v36 }
 0x13d   : > { %v1118_v37 = vpop.permute.xlu1 %1117 }
 0x13e   : > { %v1088_v38 = vpop.permute.xlu0 %1087  ;;  %1640 = vmatpush.xpose.msk.msrb.mxu2 %vm704_vm1, %v1118_v37  ;;  %v1736_v37 = vpack.i.bf16 %v2230_v46, %v2227_v44 }
 0x13f   : > { %1639 = vmatmul.msk.f32.vlgmr.msrb.gmra.mxu1 %vm704_vm1, %v1088_v38 }
 0x142   : > { %1641 = vmatmul.msk.f32.vlgmr.msrb.gmra.mxu2 %vm704_vm1, %v1116_v40 }
 0x145   : > { %v754_v39 = vpop.f32.mrf.mxu3 }
 0x146   : > { %v760_v41 = vsel %vm704_vm1, %v754_v39, -inf }
 0x147   : > { %761 = vmax.xlane.f32.xlu2 %v760_v41 }
 0x1ac   : > { %v759_v47 = vpop.xlane.xlu0 %758  ;;  %v850_v50 = vpop.f32.mrf.mxu1 }
 0x1ad   : > { %v763_v48 = vsub.f32 %v728_v32, %v759_v47  ;;  %v881_v51 = vsel %vm704_vm1, %v850_v50, -inf }
 0x1ae   : > { %882 = vmax.xlane.f32.xlu1 %v881_v51 }
 0x1af   : > { %v765_v49 = vmul.f32 1.442695, %v763_v48 }
 0x1b1   : > { %1751 = vpow2.f32 %v765_v49 }
 0x1b4   : > { %v982_v53 = vpop.f32.mrf.mxu1  ;;  %v878_v54 = vpop.f32.mrf.mxu2 }
 0x1b5   : > { %v1013_v55 = vsel %vm704_vm1, %v982_v53, -inf  ;;  %v884_v57 = vsel %vm704_vm1, %v878_v54, -inf }
 0x1b6   : > { %1014 = vmax.xlane.f32.xlu2 %v1013_v55  ;;  %885 = vmax.xlane.f32.xlu0 %v884_v57 }
 0x1b7   : > { %v1752_v52 = vpop.eup %1751 }
 0x1b8   : > { %v769_v56 = vsel %vm704_vm1, %v1752_v52, 0.0 }
 0x1b9   : > { %770 = vadd.xlane.f32.xlu1 %v769_v56 }
 0x1ba   : > { %v762_v58 = vpop.xlane.xlu2 %761 }
 0x1bb   : > { %v764_v59 = vsub.f32 %v754_v39, %v762_v58 }
 0x1bc   : > { %v1112_v61 = vpop.f32.mrf.mxu1 }
 0x1bd   : > { %v767_v60 = vmul.f32 1.442695, %v764_v59  ;;  %v1010_v62 = vpop.f32.mrf.mxu2  ;;  %v1143_v63 = vsel %vm704_vm1, %v1112_v61, -inf }
 0x1be   : > { %v1016_v0 = vsel %vm704_vm1, %v1010_v62, -inf }
 0x1bf   : > { %1753 = vpow2.f32 %v767_v60  ;;  %1017 = vmax.xlane.f32.xlu2 %v1016_v0 }
 0x1c1   : > { %1144 = vmax.xlane.f32.xlu1 %v1143_v63 }
 0x1c5   : > { %v1754_v1 = vpop.eup %1753  ;;  %v1140_v3 = vpop.f32.mrf.mxu2 }
 0x1c6   : > { %v772_v2 = vsel %vm704_vm1, %v1754_v1, 0.0  ;;  %v1146_v4 = vsel %vm704_vm1, %v1140_v3, -inf }
 0x1c7   : > { %773 = vadd.xlane.f32.xlu0 %v772_v2 }
 0x1cf   : > { %1147 = vmax.xlane.f32.xlu0 %v1146_v4 }
 0x1e3   : > { %1035 = vrot.lane.b32.xlu0 %v2227_v44, %s1960_s23 }
 0x221   : > { %v883_v5 = vpop.xlane.xlu1 %882 }
 0x222   : > { %v887_v6 = vsub.f32 %v850_v50, %v883_v5 }
 0x224   : > { %v889_v7 = vmul.f32 1.442695, %v887_v6 }
 0x226   : > { %1755 = vpow2.f32 %v889_v7 }
 0x229   : > { %v1015_v10 = vpop.xlane.xlu2 %1014  ;;  %v886_v13 = vpop.xlane.xlu0 %885 }
 0x22a   : > { %v1019_v12 = vsub.f32 %v982_v53, %v1015_v10  ;;  %v888_v14 = vsub.f32 %v878_v54, %v886_v13 }
 0x22c   : > { %v771_v11 = vpop.xlane.xlu1 %770  ;;  %v1756_v15 = vpop.eup %1755  ;;  %v1021_v16 = vmul.f32 1.442695, %v1019_v12  ;;  %v891_v17 = vmul.f32 1.442695, %v888_v14 }
 0x22d   : > { %1757 = vrcp.f32 %v771_v11  ;;  %v893_v18 = vsel %vm704_vm1, %v1756_v15, 0.0 }
 0x22e   : > { %1759 = vpow2.f32 %v1021_v16  ;;  %894 = vadd.xlane.f32.xlu2 %v893_v18  ;;  %v1251_v16 = vld [vmem:[#allocation5 + $0x10] sm:$0xff]  ;;  %v1249_v18 = vld [vmem:[#allocation5] sm:$0xff] }
 0x22f   : > { %1761 = vpow2.f32 %v891_v17  ;;  %v1250_v17 = vld [vmem:[#allocation5 + $0x8] sm:$0xff] }
 0x232   : > { %v1018_v23 = vpop.xlane.xlu2 %1017 }
 0x233   : > { %v1758_v19 = vpop.eup %1757  ;;  %v1020_v26 = vsub.f32 %v1010_v62, %v1018_v23 }
 0x234   : > { %v1145_v20 = vpop.xlane.xlu1 %1144  ;;  %v777_v21 = vmul.f32 %v1758_v19, %v1752_v52  ;;  %v1760_v24 = vpop.eup %1759 }
 0x235   : > { %v1149_v22 = vsub.f32 %v1112_v61, %v1145_v20  ;;  %v1762_v27 = vpop.eup %1761  ;;  %v1025_v28 = vsel %vm704_vm1, %v1760_v24, 0.0  ;;  %v1023_v31 = vmul.f32 1.442695, %v1020_v26 }
 0x236   : > { %1624 = vmatmul.msk.f32.vlgmr.msrb.gmra.mxu3 %vm704_vm1, %v777_v21  ;;  %1026 = vadd.xlane.f32.xlu1 %v1025_v28  ;;  %v896_v29 = vsel %vm704_vm1, %v1762_v27, 0.0 }
 0x237   : > { %v1151_v25 = vmul.f32 1.442695, %v1149_v22  ;;  %897 = vadd.xlane.f32.xlu0 %v896_v29 }
 0x239   : > { %1763 = vpow2.f32 %v1151_v25 }
 0x23a   : > { %v774_v30 = vpop.xlane.xlu0 %773 }
 0x23b   : > { %1765 = vrcp.f32 %v774_v30 }
 0x23c   : > { %1767 = vpow2.f32 %v1023_v31  ;;  %v1744_v31 = vld [vmem:[%s2386_s8] ss:$0 sm:$0xff] }
 0x23f   : > { %v1764_v32 = vpop.eup %1763 }
 0x240   : > { %v1155_v33 = vsel %vm704_vm1, %v1764_v32, 0.0 }
 0x241   : > { %v1766_v34 = vpop.eup %1765  ;;  %1156 = vadd.xlane.f32.xlu1 %v1155_v33 }
 0x242   : > { %v778_v35 = vmul.f32 %v1766_v34, %v1754_v1  ;;  %v1768_v36 = vpop.eup %1767  ;;  %v1148_v39 = vpop.xlane.xlu0 %1147 }
 0x243   : > { %v1028_v38 = vsel %vm704_vm1, %v1768_v36, 0.0  ;;  %v1150_v40 = vsub.f32 %v1140_v3, %v1148_v39 }
 0x244   : > { %1625 = vmatmul.msk.f32.vlgmr.msra.gmra.mxu0 %vm704_vm1, %v778_v35 }
 0x245   : > { %v1153_v41 = vmul.f32 1.442695, %v1150_v40  ;;  %v1966_v40 = vmov 32.0  }
 0x246   : > { %1737 = vrot.lane.b32.xlu2 %v1736_v37, %s1961_s18  ;;  %s1655_s18 = sshll.u32 %s2079_s28, 4  ;;  %s1493_s28 = scalar_lea.sflag [#allocation4], %s590_s5 }
 0x247   : > { %1769 = vpow2.f32 %v1153_v41 }
 0x249   : > { %1029 = vadd.xlane.f32.xlu1 %v1028_v38 }
 0x24b   : > { %1061 = vrot.lane.b32.xlu0 %v2230_v46, %s1960_s23  ;;  %s592_s23 = scalar_lea.vmem [#allocation8], %s1611_s30 }
 0x24d   : > { %v1770_v42 = vpop.eup %1769 }
 0x24e   : > { %v1158_v43 = vsel %vm704_vm1, %v1770_v42, 0.0 }
 0x253   : > { %1191 = vrot.lane.b32.xlu0 %v2230_v46, %s1962_s7 }
 0x255   : > { %v1036_v47 = vpop.permute.xlu0 %1035 }
 0x262   : > { %1165 = vrot.lane.b32.xlu1 %v2227_v44, %s1962_s7 }
 0x26f   : > { %1159 = vadd.xlane.f32.xlu2 %v1158_v43 }
 0x2a1   : > { %v895_v45 = vpop.xlane.xlu2 %894 }
 0x2a2   : > { %1771 = vrcp.f32 %v895_v45 }
 0x2a8   : > { %v1772_v48 = vpop.eup %1771 }
 0x2a9   : > { %v1738_v49 = vpop.permute.xlu2 %1737  ;;  %v1027_v50 = vpop.xlane.xlu1 %1026  ;;  %v901_v53 = vmul.f32 %v1772_v48, %v1756_v15  ;;  %v1252_v15 = vld [vmem:[#allocation5 + $0x18] sm:$0xff] }
 0x2aa   : > { %v1740_v51 = vunpack.i.h.bf16 %v1738_v49  ;;  %v1739_v52 = vunpack.i.l.bf16 %v1738_v49  ;;  %1773 = vrcp.f32 %v1027_v50  ;;  %v898_v46 = vpop.xlane.xlu0 %897  ;;  %1275 = vmatpush.msra.mxu1 %v1252_v15  ;;  %v1393_v15 = vld [vmem:[%s2391_s13 + $0x18] sm:$0xff] }
 0x2ab   : > { %1775 = vrcp.f32 %v898_v46 }
 0x2ac   : > { %925 = vmatpush.msra.mxu3 %v1739_v52  ;;  %952 = vmatpush.msrb.mxu0 %v1740_v51 }
 0x2ad   : > { %1630 = vmatmul.msk.f32.vlgmr.msra.gmra.mxu3 %vm704_vm1, %v901_v53  ;;  %1276 = vmatpush.msra.mxu1 %v1251_v16 }
 0x2ae   : > { %1056 = vmatpush.msrb.mxu3 %v1036_v47 }
 0x2af   : > { %1277 = vmatpush.msra.mxu1 %v1250_v17  ;;  %v1746_v17 = vld [vmem:[%s2388_s10] ss:$0 sm:$0xff] }
 0x2b0   : > { %v1774_v44 = vpop.eup %1773 }
 0x2b1   : > { %v1776_v54 = vpop.eup %1775  ;;  %v1033_v57 = vmul.f32 %v1774_v44, %v1760_v24  ;;  %1278 = vmatpush.msra.mxu1 %v1249_v18 }
 0x2b2   : > { %v902_v56 = vmul.f32 %v1776_v54, %v1762_v27 }
 0x2b4   : > { %v1157_v55 = vpop.xlane.xlu1 %1156  ;;  %1631 = vmatmul.msk.f32.vlgmr.msrb.gmra.mxu0 %vm704_vm1, %v902_v56  ;;  %v1353_v56 = vld [vmem:[#allocation7 + $0x10] sm:$0xff] }
 0x2b5   : > { %1636 = vmatmul.msk.f32.vlgmr.msrb.gmra.mxu3 %vm704_vm1, %v1033_v57  ;;  %v1352_v57 = vld [vmem:[#allocation7 + $0x8] sm:$0xff] }
 0x2b9   : > { %v799_v5 = vpop.f32.mrf.mxu3 }
 0x2bc   : > { %v1030_v58 = vpop.xlane.xlu1 %1029 }
 0x2bd   : > { %1777 = vrcp.f32 %v1030_v58  ;;  %v1062_v59 = vpop.permute.xlu0 %1061  ;;  %v1351_v58 = vld [vmem:[#allocation7] sm:$0xff] }
 0x2be   : > { %1082 = vmatpush.msra.mxu0 %v1062_v59  ;;  %1779 = vrcp.f32 %v1157_v55  ;;  %v1354_v55 = vld [vmem:[#allocation7 + $0x18] sm:$0xff] }
 0x2bf   : > { %1377 = vmatpush.msra.mxu2 %v1354_v55 }
 0x2c1   : > { %v822_v7 = vpop.f32.mrf.mxu0  ;;  %1378 = vmatpush.msra.mxu2 %v1353_v56 }
 0x2c3   : > { %v1778_v60 = vpop.eup %1777  ;;  %1379 = vmatpush.msra.mxu2 %v1352_v57 }
 0x2c4   : > { %v1034_v61 = vmul.f32 %v1778_v60, %v1768_v36  ;;  %v1780_v63 = vpop.eup %1779 }
 0x2c5   : > { %v1192_v62 = vpop.permute.xlu0 %1191  ;;  %v1163_v0 = vmul.f32 %v1780_v63, %v1764_v32  ;;  %1380 = vmatpush.msra.mxu2 %v1351_v58 }
 0x2c6   : > { %1637 = vmatmul.msk.f32.vlgmr.msra.gmra.mxu0 %vm704_vm1, %v1034_v61 }
 0x2c7   : > { %1212 = vmatpush.msrb.mxu0 %v1192_v62 }
 0x2d4   : > { %v1166_v1 = vpop.permute.xlu1 %1165 }
 0x2d5   : > { %1186 = vmatpush.msra.mxu3 %v1166_v1 }
 0x2d6   : > { %1642 = vmatmul.msk.f32.vlgmr.msra.gmra.mxu3 %vm704_vm1, %v1163_v0 }
 0x2e2   : > { %v1160_v2 = vpop.xlane.xlu2 %1159 }
 0x2e3   : > { %1781 = vrcp.f32 %v1160_v2  ;;  %v1397_v2 = vld [vmem:[%s2391_s13 + $0x38] sm:$0xff] }
 0x2e4   : > { %1783 = vrcp.f32 %v1966_v40  ;;  %1417 = vmatpush.msrb.mxu3 %v1397_v2  ;;  %v1748_v40 = vld [vmem:[%s2392_s14] ss:$0 sm:$0xff] }
 0x2e9   : > { %v1782_v3 = vpop.eup %1781 }
 0x2ea   : > { %v1164_v4 = vmul.f32 %v1782_v3, %v1770_v42  ;;  %v1784_v41 = vpop.eup %1783  ;;  %v1396_v3 = vld [vmem:[%s2391_s13 + $0x30] sm:$0xff] }
 0x2eb   : > { %v1297_v42 = vmul.f32 32.0, %v1784_v41  ;;  %vm1301_vm4 = vweird.f32 %v1784_v41  ;;  %1418 = vmatpush.msrb.mxu3 %v1396_v3 }
 0x2ec   : > { %1643 = vmatmul.msk.f32.vlgmr.msrb.gmra.mxu0 %vm704_vm1, %v1164_v4 }
 0x2ed   : > { %v1298_v43 = vsub.f32 1.0, %v1297_v42 }
 0x2ef   : > { %v1299_v45 = vmul.f32 %v1784_v41, %v1298_v43 }
 0x2f1   : > { %v1300_v47 = vadd.f32 %v1784_v41, %v1299_v45 }
 0x2f3   : > { %v2279_v48 = vsel %vm1301_vm4, %v1784_v41, %v1300_v47 }
 0x330   : > { %v927_v6 = vpop.f32.mrf.mxu3 }
 0x331   : > { %1219 = vrot.lane.b32.xlu1 %v927_v6, %s1963_s27  ;;  %v954_v11 = vpop.f32.mrf.mxu0 }
 0x338   : > { %v1058_v10 = vpop.f32.mrf.mxu3 }
 0x339   : > { %1227 = vrot.lane.b32.xlu0 %v1058_v10, %s1964_s0 }
 0x341   : > { %1221 = vrot.lane.b32.xlu0 %v954_v11, %s1963_s27  ;;  %v1394_v11 = vld [vmem:[%s2391_s13 + $0x20] sm:$0xff] }
 0x343   : > { %v1084_v13 = vpop.f32.mrf.mxu0 }
 0x359   : > { %v1188_v12 = vpop.f32.mrf.mxu3 }
 0x35a   : > { %1235 = vrot.lane.b32.xlu1 %v1188_v12, %s1965_s1  ;;  %v1745_v12 = vld [vmem:[%s2387_s9] ss:$0 sm:$0xff] }
 0x362   : > { %1229 = vrot.lane.b32.xlu1 %v1084_v13, %s1964_s0  ;;  %s1504_s0 = scalar_lea.hbm %s2395_s17, %s1655_s18  ;;  %s1903_s18 = scalar_lea.hbm %s2395_s17, 32 }
 0x363   : > { %s1507_s20 = sshll.u32 %s1504_s0, 4  ;;  %s1508_s20 = int_to_ptr.hbm [resolvable:$true] %s1507_s20 }
 0x364   : > { %s1897_s21 = sshra.s32 %s1508_s20, 4  ;;  %s1898_s21 = int_to_ptr.hbm [resolvable:$true] %s1897_s21 }
 0x365   : > { %s1899_s29 = scalar_lea.hbm %s1898_s21, 16  ;;  %p1904_p3 = scmp.lt.s32.totalorder %s1898_s21, %s2395_s17 }
 0x366   : > { %p1900_p0 = scmp.ne.s32.totalorder %s1898_s21, %s1899_s29  ;;  %p1905_p4 = scmp.lt.s32.totalorder %s1903_s18, %s1899_s29 }
 0x368   : > { %p1901_p1 = pnand %p1900_p0, %p2096_p5  ;;  %p1906_p7 = por %p1905_p4, %p1904_p3 }
 0x369   : > { %v1214_v14 = vpop.f32.mrf.mxu0 }
 0x36a   : > { %1237 = vrot.lane.b32.xlu0 %v1214_v14, %s1965_s1  ;;  %s1505_s1 = sshll.u32 %s592_s23, 4  ;;  %p1902_p2 = pneg %p1901_p1  ;;  %s1506_s1 = int_to_ptr.vmem [resolvable:$true] %s1505_s1 }
 0x36c   : > { %p1907_p8 = pnand %p1906_p7, %p1902_p2 }
 0x3a3   : > { %v1220_v19 = vpop.permute.xlu1 %1219 }
 0x3a4   : > { %v1241_v21 = vsel %vm704_vm1, %v799_v5, %v1220_v19  ;;  %v1395_v5 = vld [vmem:[%s2391_s13 + $0x28] sm:$0xff] }
 0x3a5   : > { %1419 = vmatpush.msrb.mxu3 %v1395_v5  ;;  %v1749_v5 = vld [vmem:[%s2393_s15] ss:$0 sm:$0xff] }
 0x3a7   : > { %1420 = vmatpush.msrb.mxu3 %v1394_v11 }
 0x3a9   : > { %1421 = vmatpush.msrb.mxu3 %v1393_v15 }
 0x3ab   : > { %v1228_v20 = vpop.permute.xlu0 %1227 }
 0x3ac   : > { %v1244_v22 = vsel %vm1243_vm2, %v1241_v21, %v1228_v20 }
 0x3b3   : > { %v1222_v25 = vpop.permute.xlu0 %1221 }
 0x3b4   : > { %v1242_v27 = vsel %vm704_vm1, %v822_v7, %v1222_v25 }
 0x3cc   : > { %v1236_v23 = vpop.permute.xlu1 %1235 }
 0x3cd   : > { %v1247_v24 = vsel %vm1246_vm3, %v1244_v22, %v1236_v23 }
 0x3ce   : > { %1644 = vmatmul.msk.f32.vlgmr.msra.gmra.mxu1 %vm610_vm0, %v1247_v24 }
 0x3d4   : > { %v1230_v26 = vpop.permute.xlu1 %1229 }
 0x3d5   : > { %v1245_v28 = vsel %vm1243_vm2, %v1242_v27, %v1230_v26 }
 0x3dc   : > { %v1238_v29 = vpop.permute.xlu0 %1237 }
 0x3dd   : > { %v1248_v30 = vsel %vm1246_vm3, %v1245_v28, %v1238_v29 }
 0x3de   : > { %1645 = vmatmul.msk.f32.gmra.mxu1 %vm610_vm0, %v1248_v30  ;;  %v1392_v30 = vld [vmem:[%s2391_s13 + $0x10] sm:$0xff] }
 0x3df   : > { %1422 = vmatpush.msrb.mxu3 %v1392_v30 }
 0x44b   : > { %v1280_v32 = vpop.f32.mrf.mxu1 }
 0x44c   : > { %v1281_v33 = vadd.f32 %v1744_v31, %v1280_v32  ;;  %v1390_v32 = vld [vmem:[%s2391_s13] sm:$0xff] }
 0x44e   : > { %v1286_v34 = vadd.f32 %v1281_v33, %v2172_v8  ;;  %v1747_v33 = vld [vmem:[%s2390_s12] ss:$0 sm:$0xff] }
 0x450   : > { %v1290_v35 = vsel %vm610_vm0, %v1286_v34, 0.0 }
 0x451   : > { %1291 = vadd.xlane.f32.xlu2 %v1290_v35 }
 0x45b   : > { %v1283_v36 = vpop.f32.mrf.mxu1 }
 0x45c   : > { %v1284_v37 = vadd.f32 %v1744_v31, %v1283_v36  ;;  %v1391_v31 = vld [vmem:[%s2391_s13 + $0x8] sm:$0xff] }
 0x45d   : > { %1423 = vmatpush.msrb.mxu3 %v1391_v31 }
 0x45e   : > { %v1287_v38 = vadd.f32 %v1284_v37, %v2178_v9 }
 0x45f   : > { %1424 = vmatpush.msrb.mxu3 %v1390_v32 }
 0x460   : > { %v1293_v39 = vsel %vm610_vm0, %v1287_v38, 0.0 }
 0x461   : > { %1294 = vadd.xlane.f32.xlu1 %v1293_v39 }
 0x4c4   : > { %v1292_v8 = vpop.xlane.xlu2 %1291 }
 0x4c5   : > { %v1303_v49 = vmul.f32 %v2279_v48, %v1292_v8 }
 0x4c7   : > { %v1305_v50 = vsub.f32 %v1286_v34, %v1303_v49 }
 0x4c9   : > { %v1307_v51 = vmul.f32 %v1305_v50, %v1305_v50 }
 0x4cb   : > { %v1309_v9 = vsel %vm610_vm0, %v1307_v51, 0.0 }
 0x4cc   : > { %1310 = vadd.xlane.f32.xlu0 %v1309_v9 }
 0x4d4   : > { %v1295_v52 = vpop.xlane.xlu1 %1294 }
 0x4d5   : > { %v1304_v46 = vmul.f32 %v2279_v48, %v1295_v52 }
 0x4d7   : > { %v1306_v53 = vsub.f32 %v1287_v38, %v1304_v46 }
 0x4d9   : > { %v1308_v44 = vmul.f32 %v1306_v53, %v1306_v53 }
 0x4db   : > { %v1312_v54 = vsel %vm610_vm0, %v1308_v44, 0.0 }
 0x4dc   : > { %1313 = vadd.xlane.f32.xlu2 %v1312_v54 }
 0x53f   : > { %v1311_v59 = vpop.xlane.xlu0 %1310 }
 0x540   : > { %v1315_v60 = vmul.f32 %v1311_v59, %v2279_v48 }
 0x542   : > { %v1317_v61 = vadd.f32 1e-05, %v1315_v60 }
 0x544   : > { %1785 = vrsqrt.f32 %v1317_v61  ;;  %vm1325_vm6 = vweird.f32 %v1317_v61 }
 0x54a   : > { %v1786_v62 = vpop.eup %1785 }
 0x54b   : > { %v1320_v63 = vmul.f32 %v1786_v62, %v1317_v61  ;;  %vm1326_vm5 = vweird.f32 %v1786_v62 }
 0x54c   : > { %vm1327_vm7 = vmor %vm1325_vm6, %vm1326_vm5 }
 0x54d   : > { %v1321_v0 = vmul.f32 %v1786_v62, %v1320_v63 }
 0x54f   : > { %v1322_v1 = vmul.f32 0.5, %v1321_v0  ;;  %v1314_v6 = vpop.xlane.xlu2 %1313 }
 0x550   : > { %v1316_v10 = vmul.f32 %v1314_v6, %v2279_v48 }
 0x551   : > { %v1323_v4 = vsub.f32 1.5, %v1322_v1 }
 0x552   : > { %v1318_v14 = vadd.f32 1e-05, %v1316_v10  ;;  %v1750_v10 = vld [vmem:[%s2394_s16] ss:$0 sm:$0xff] }
 0x553   : > { %v1324_v7 = vmul.f32 %v1786_v62, %v1323_v4 }
 0x554   : > { %1787 = vrsqrt.f32 %v1318_v14  ;;  %vm1335_vm9 = vweird.f32 %v1318_v14 }
 0x555   : > { %v1328_v13 = vsel %vm1327_vm7, %v1786_v62, %v1324_v7 }
 0x556   : > { %v1339_v16 = vmul.f32 %v1328_v13, %v1305_v50 }
 0x558   : > { %v1344_v18 = vmul.f32 %v1745_v12, %v1339_v16 }
 0x55a   : > { %v1349_v19 = vadd.f32 %v1746_v17, %v1344_v18  ;;  %v1788_v20 = vpop.eup %1787 }
 0x55b   : > { %v1330_v21 = vmul.f32 %v1788_v20, %v1318_v14  ;;  %vm1336_vm8 = vweird.f32 %v1788_v20 }
 0x55c   : > { %1646 = vmatmul.msk.f32.vlgmr.msra.gmra.mxu2 %vm610_vm0, %v1349_v19  ;;  %vm1337_vm10 = vmor %vm1335_vm9, %vm1336_vm8 }
 0x55d   : > { %v1331_v22 = vmul.f32 %v1788_v20, %v1330_v21 }
 0x55f   : > { %v1332_v23 = vmul.f32 0.5, %v1331_v22 }
 0x561   : > { %v1333_v24 = vsub.f32 1.5, %v1332_v23 }
 0x563   : > { %v1334_v25 = vmul.f32 %v1788_v20, %v1333_v24 }
 0x565   : > { %v1338_v26 = vsel %vm1337_vm10, %v1788_v20, %v1334_v25 }
 0x566   : > { %v1340_v27 = vmul.f32 %v1338_v26, %v1306_v53 }
 0x568   : > { %v1345_v28 = vmul.f32 %v1745_v12, %v1340_v27 }
 0x56a   : > { %v1350_v29 = vadd.f32 %v1746_v17, %v1345_v28 }
 0x56c   : > { %1647 = vmatmul.msk.f32.gmra.mxu2 %vm610_vm0, %v1350_v29 }
 0x5df   : > { %v1382_v34 = vpop.f32.mrf.mxu2 }
 0x5e0   : > { %v1383_v35 = vadd.f32 %v1747_v33, %v1382_v34 }
 0x5e2   : > { %v1388_v36 = vmax.f32 %v1383_v35, 0.0 }
 0x5e4   : > { %1648 = vmatmul.msk.f32.vlgmr.msrb.gmra.mxu3 %vm1402_vm11, %v1388_v36 }
 0x5ef   : > { %v1385_v37 = vpop.f32.mrf.mxu2 }
 0x5f0   : > { %v1386_v38 = vadd.f32 %v1747_v33, %v1385_v37 }
 0x5f2   : > { %v1389_v39 = vmax.f32 %v1386_v38, 0.0 }
 0x5f4   : > { %1649 = vmatmul.msk.f32.gmra.mxu3 %vm1402_vm11, %v1389_v39 }
 0x667   : > { %v1426_v41 = vpop.f32.mrf.mxu3 }
 0x668   : > { %v1427_v42 = vadd.f32 %v1748_v40, %v1426_v41 }
 0x66a   : > { %v1432_v43 = vadd.f32 %v1427_v42, %v1349_v19 }
 0x66c   : > { %v1436_v45 = vsel %vm610_vm0, %v1432_v43, 0.0 }
 0x66d   : > { %1437 = vadd.xlane.f32.xlu2 %v1436_v45 }
 0x677   : > { %v1429_v47 = vpop.f32.mrf.mxu3 }
 0x678   : > { %v1430_v8 = vadd.f32 %v1748_v40, %v1429_v47 }
 0x67a   : > { %v1433_v49 = vadd.f32 %v1430_v8, %v1350_v29 }
 0x67c   : > { %v1439_v50 = vsel %vm610_vm0, %v1433_v49, 0.0 }
 0x67d   : > { %1440 = vadd.xlane.f32.xlu2 %v1439_v50 }
 0x6e0   : > { %v1438_v51 = vpop.xlane.xlu2 %1437 }
 0x6e1   : > { %v1442_v9 = vmul.f32 %v1438_v51, %v2279_v48 }
 0x6e3   : > { %v1444_v52 = vsub.f32 %v1432_v43, %v1442_v9 }
 0x6e5   : > { %v1446_v46 = vmul.f32 %v1444_v52, %v1444_v52 }
 0x6e7   : > { %v1448_v53 = vsel %vm610_vm0, %v1446_v46, 0.0 }
 0x6e8   : > { %1449 = vadd.xlane.f32.xlu2 %v1448_v53 }
 0x6f0   : > { %v1441_v44 = vpop.xlane.xlu2 %1440 }
 0x6f1   : > { %v1443_v54 = vmul.f32 %v1441_v44, %v2279_v48 }
 0x6f3   : > { %v1445_v55 = vsub.f32 %v1433_v49, %v1443_v54 }
 0x6f5   : > { %v1447_v56 = vmul.f32 %v1445_v55, %v1445_v55 }
 0x6f7   : > { %v1451_v57 = vsel %vm610_vm0, %v1447_v56, 0.0 }
 0x6f8   : > { %1452 = vadd.xlane.f32.xlu2 %v1451_v57 }
 0x75b   : > { %v1450_v58 = vpop.xlane.xlu2 %1449 }
 0x75c   : > { %v1454_v59 = vmul.f32 %v1450_v58, %v2279_v48 }
 0x75e   : > { %v1456_v60 = vadd.f32 1e-05, %v1454_v59 }
 0x760   : > { %1789 = vrsqrt.f32 %v1456_v60  ;;  %vm1464_vm13 = vweird.f32 %v1456_v60 }
 0x766   : > { %v1790_v61 = vpop.eup %1789 }
 0x767   : > { %v1459_v62 = vmul.f32 %v1790_v61, %v1456_v60  ;;  %vm1465_vm12 = vweird.f32 %v1790_v61 }
 0x768   : > { %vm1466_vm14 = vmor %vm1464_vm13, %vm1465_vm12 }
 0x769   : > { %v1460_v63 = vmul.f32 %v1790_v61, %v1459_v62 }
 0x76b   : > { %v1461_v0 = vmul.f32 0.5, %v1460_v63  ;;  %v1453_v2 = vpop.xlane.xlu2 %1452 }
 0x76c   : > { %v1455_v4 = vmul.f32 %v1453_v2, %v2279_v48 }
 0x76d   : > { %v1462_v1 = vsub.f32 1.5, %v1461_v0 }
 0x76e   : > { %v1457_v7 = vadd.f32 1e-05, %v1455_v4 }
 0x76f   : > { %v1463_v3 = vmul.f32 %v1790_v61, %v1462_v1 }
 0x770   : > { %1791 = vrsqrt.f32 %v1457_v7  ;;  %vm1474_vm1 = vweird.f32 %v1457_v7 }
 0x771   : > { %v1467_v6 = vsel %vm1466_vm14, %v1790_v61, %v1463_v3 }
 0x772   : > { %v1478_v11 = vmul.f32 %v1467_v6, %v1444_v52 }
 0x774   : > { %v1483_v12 = vmul.f32 %v1749_v5, %v1478_v11 }
 0x776   : > { %v1488_v13 = vadd.f32 %v1750_v10, %v1483_v12  ;;  %v1792_v48 = vpop.eup %1791 }
 0x777   : > { %v1469_v14 = vmul.f32 %v1792_v48, %v1457_v7  ;;  %vm1475_vm15 = vweird.f32 %v1792_v48 }
 0x778   : > { %1490 = vst.msk [vmem:[%s592_s23] sm:$0xff] %vm610_vm0, %v1488_v13  ;;  %vm1476_vm2 = vmor %vm1474_vm1, %vm1475_vm15 }
 0x779   : > { %v1470_v15 = vmul.f32 %v1792_v48, %v1469_v14 }
 0x77b   : > { %v1471_v16 = vmul.f32 0.5, %v1470_v15 }
 0x77d   : > { %v1472_v17 = vsub.f32 1.5, %v1471_v16 }
 0x77f   : > { %v1473_v18 = vmul.f32 %v1792_v48, %v1472_v17 }
 0x781   : > { %v1477_v19 = vsel %vm1476_vm2, %v1792_v48, %v1473_v18 }
 0x782   : > { %v1479_v20 = vmul.f32 %v1477_v19, %v1445_v55 }
 0x784   : > { %v1484_v21 = vmul.f32 %v1749_v5, %v1479_v20 }
 0x786   : > { %v1489_v22 = vadd.f32 %v1750_v10, %v1484_v21 }
 0x788   : > { %1491 = vst.msk [vmem:[%s592_s23 + $0x8] sm:$0xff] %vm610_vm0, %v1489_v22 }
 0x789   : > { %1910 = shalt.err (!%p1907_p8)
}
 0x78a   : > { %s1967_s5 = smov 128  }
 0x78b   : > { %1668 = dma.vmem_to_hbm [thread:$0]  (%p2096_p5), %s1506_s1, 256, %s1508_s20, %s1493_s28, %s1967_s5, %s1967_s5, %s1963_s27  }
 0x78c PF: > { %s2427_s23 = sld [smem:[#allocation14_spill]] }
 0x78d   : > { %s2428_s0 = sld [smem:[#allocation12_spill]] }
 0x792   : > { %p1690_p9 = scmp.ge.s32.totalorder %s2427_s23, 2 }
 0x793   : > { %s1522_s22 = sand.u32 1, %s2428_s0  }
 0x794   : > { %p1681_p10 = pnand %p1690_p9, %p2100_p6  ;;  %s1523_s30 = scalar_lea.sflag [#allocation4], %s1522_s22 }
 0x796   : > { %p1682_p11 = pneg %p1681_p10 }
 0x798   : > { %1936 = dma.done.wait (%p1682_p11), %s1523_s30, 256  }
 0x799   : > { %1938 = vsyncadd (%p1682_p11), %s1523_s30, 4294967040  ;;  %s2430_s27 = sld [smem:[#allocation15_spill]]  ;;  %s2433_s24 = smov %s1945_s25 }
 0x79a   : > { %s2431_s21 = sld [smem:[#allocation13_spill]] }
 0x79b   : > { %s2432_s26 = sld [smem:[#allocation16_spill]] }
 0x79f   : > { %p29_p12 = scmp.ge.s32.totalorder %s2430_s27, 4  }
 0x7a0   : > { %s2434_s25 = smov %s2431_s21 }
 0x7a1   :  { %31 = sbr.rel (!%p29_p12) target bundleno = 11 (0xb), region = 136 }
 0x7a6   :  { %1529 = vsyncpa [#allocation3], 1 }
 0x7a7   :  { %1531 = vsyncpa [#allocation3 + $0x1], 1 }
 0x7a8   :  { %1532 = vsyncpa [#allocation6], 1 }
 0x7a9   :  { %1533 = vsyncpa [#allocation4], 1 }
 0x7aa   :  { %1535 = vsyncpa [#allocation4 + $0x1], 1 }

</bundles_post_ra>
